<compile_context>
chip_gen: v6e
topology: v6e:2x2x1
jax: 0.10.0
libtpu: 0.0.40
codegen_flags: <defaults>
</compile_context>

<pallas_src>
import functools
import math

import jax
import jax.numpy as jnp
from jax.experimental import pallas as pl
from jax.experimental.pallas import tpu as pltpu

NEG_INF = -1e30
VMEM_LIMIT = 48 * 1024 * 1024  # > 32 MiB scoped default, < v7x 64 MiB physical


def _round_up(x, m):
    return (x + m - 1) // m * m


def _tile_and_pad(dim, target):
    """Pick (tile, padded_dim). Full-dim blocks are always legal; otherwise use
    `target` (a multiple of the (8,128) tiling) and pad the array up to it."""
    if dim <= target:
        return dim, dim
    return target, _round_up(dim, target)


def _maybe_bf16(x):
    """MXU operands: f32 -> bf16 (accumulation stays f32 via preferred_element_type)."""
    return x.astype(jnp.bfloat16) if x.dtype == jnp.float32 else x


# ---------------------------------------------------------------------------
# Grouped tiled linear:  y[g] = x @ w[g].T + b[g]   ->  (G, M, Eg)
# Used for the fused QKV (G=3), fused KV (G=2) and single (G=1) projections.
# The grouped out_spec emits Q/K/V directly in attention-ready layout, so the
# wrapper never slices the projected result.
# ---------------------------------------------------------------------------

def _grouped_linear_kernel(x_ref, w_ref, b_ref, o_ref, acc_ref):
    @pl.when(pl.program_id(3) == 0)
    def _():
        acc_ref[...] = jnp.zeros_like(acc_ref)

    # x block (tm, tk), w block (tn, tk): contract both K axes (trans_b on the MXU).
    acc_ref[...] += jax.lax.dot_general(
        _maybe_bf16(x_ref[...]), _maybe_bf16(w_ref[...]),
        (((1,), (1,)), ((), ())),
        preferred_element_type=jnp.float32)

    @pl.when(pl.program_id(3) == pl.num_programs(3) - 1)
    def _():
        o_ref[...] = (acc_ref[...] + b_ref[...].astype(jnp.float32)).astype(o_ref.dtype)


def grouped_linear(x2d, w, b, groups, *, tm=512, tn=512, tk=512):
    """y = x2d @ w.T + b, with the N = groups*Eg axis emitted as (groups, M, Eg)."""
    M, K = x2d.shape
    N = w.shape[0]
    Eg = N // groups

    tm, Mp = _tile_and_pad(M, tm)
    tn, Egp = _tile_and_pad(Eg, tn)
    tk, Kp = _tile_and_pad(K, tk)

    w3 = w.reshape(groups, Eg, K)          # contiguous reshapes: no copy
    b3 = b.reshape(groups, 1, Eg)

    xp = x2d if (Mp == M and Kp == K) else jnp.pad(x2d, ((0, Mp - M), (0, Kp - K)))
    wp = w3 if (Egp == Eg and Kp == K) else jnp.pad(
        w3, ((0, 0), (0, Egp - Eg), (0, Kp - K)))
    bp = b3 if Egp == Eg else jnp.pad(b3, ((0, 0), (0, 0), (0, Egp - Eg)))

    grid = (groups, Mp // tm, Egp // tn, Kp // tk)
    flops = 2 * groups * Mp * Egp * Kp
    bytes_accessed = (Mp * Kp + groups * Egp * Kp + groups * Mp * Egp) * x2d.dtype.itemsize

    out = pl.pallas_call(
        _grouped_linear_kernel,
        out_shape=jax.ShapeDtypeStruct((groups, Mp, Egp), x2d.dtype),
        grid=grid,
        in_specs=[
            pl.BlockSpec((tm, tk), lambda g, i, j, k: (i, k)),
            pl.BlockSpec((None, tn, tk), lambda g, i, j, k: (g, j, k)),
            pl.BlockSpec((None, 1, tn), lambda g, i, j, k: (g, 0, j)),
        ],
        out_specs=pl.BlockSpec((None, tm, tn), lambda g, i, j, k: (g, i, j)),
        scratch_shapes=[pltpu.VMEM((tm, tn), jnp.float32)],
        compiler_params=pltpu.CompilerParams(
            dimension_semantics=("parallel", "parallel", "parallel", "arbitrary"),
            vmem_limit_bytes=VMEM_LIMIT),
        cost_estimate=pl.CostEstimate(flops=flops, transcendentals=0,
                                      bytes_accessed=bytes_accessed),
    )(xp, wp, bp)

    if Mp != M or Egp != Eg:
        out = out[:, :M, :Eg]
    return out


# ---------------------------------------------------------------------------
# Flash-style multi-head attention with the output projection fused into the
# finalize.  q/k/v come in as grouped (G, B, L, E) arrays; the static group
# index is baked into each BlockSpec's index_map.
# ---------------------------------------------------------------------------

def _fused_mha_kernel(q_ref, k_ref, v_ref, wo_ref, bo_ref, o_ref,
                      m_ref, l_ref, acc_ref, *,
                      num_heads, head_dim, scale, kv_len, block_kv, mask_kv):
    ki = pl.program_id(2)

    @pl.when(ki == 0)
    def _():
        m_ref[...] = jnp.full_like(m_ref, NEG_INF)
        l_ref[...] = jnp.zeros_like(l_ref)
        acc_ref[...] = jnp.zeros_like(acc_ref)

    if mask_kv:
        kv_pos = ki * block_kv + jax.lax.broadcasted_iota(jnp.int32, (1, block_kv), 1)
        kv_valid = kv_pos < kv_len                               # (1, tkv)

    for h in range(num_heads):                                   # static unrolled loop
        sl = slice(h * head_dim, (h + 1) * head_dim)
        # Ref-level static slices: only the Dh-wide strip each matmul consumes is
        # loaded (no full-block materialization, no vreg spills).
        qh = _maybe_bf16(q_ref[:, sl])                           # (tq,  Dh)
        kh = _maybe_bf16(k_ref[:, sl])                           # (tkv, Dh)
        vh = _maybe_bf16(v_ref[:, sl])                           # (tkv, Dh)

        # scores = qh @ kh^T -- transposed operand handled natively by the MXU.
        s = jax.lax.dot_general(qh, kh, (((1,), (1,)), ((), ())),
                                preferred_element_type=jnp.float32) * scale
        if mask_kv:
            s = jnp.where(kv_valid, s, NEG_INF)

        m_prev = m_ref[h]                                        # (tq, 1) f32
        m_new = jnp.maximum(m_prev, jnp.max(s, axis=-1, keepdims=True))
        alpha = jnp.exp(m_prev - m_new)
        p = jnp.exp(s - m_new)                                   # (tq, tkv) f32
        l_ref[h] = alpha * l_ref[h] + jnp.sum(p, axis=-1, keepdims=True)
        m_ref[h] = m_new

        pv = jax.lax.dot_general(p.astype(jnp.bfloat16), vh,
                                 (((1,), (0,)), ((), ())),
                                 preferred_element_type=jnp.float32)
        acc_ref[:, sl] = alpha * acc_ref[:, sl] + pv

    @pl.when(ki == pl.num_programs(2) - 1)
    def _():
        # Normalize per head in place (once per q tile), no concatenate.
        for h in range(num_heads):
            sl = slice(h * head_dim, (h + 1) * head_dim)
            inv = pl.reciprocal(l_ref[h], approx=True)           # EUP slot -> ~free
            acc_ref[:, sl] = acc_ref[:, sl] * inv
        # Fused output projection: (tq, E) @ out_proj.weight^T + bias,
        # single lane-dense store of the final block.
        out = jax.lax.dot_general(
            acc_ref[...].astype(jnp.bfloat16), _maybe_bf16(wo_ref[...]),
            (((1,), (1,)), ((), ())),
            preferred_element_type=jnp.float32)
        o_ref[...] = (out + bo_ref[...].astype(jnp.float32)).astype(o_ref.dtype)


def fused_mha_outproj(q4, k4, v4, qg, kg, vg, w_out, b_out, num_heads, scale,
                      *, tq=256, tkv=256):
    """q4 (Gq,B,L,E), k4 (Gk,B,S,E), v4 (Gv,B,S,E); returns out_proj(attn) (B,L,E)."""
    _, B, L, E = q4.shape
    S = k4.shape[2]
    head_dim = E // num_heads

    tq, Lp = _tile_and_pad(L, tq)
    tkv, Sp = _tile_and_pad(S, tkv)

    def pad_seq(a, cur, tgt):
        return a if tgt == cur else jnp.pad(a, ((0, 0), (0, 0), (0, tgt - cur), (0, 0)))

    # Padding is a fallback only (tiles usually divide); reuse by identity.
    qp = pad_seq(q4, L, Lp)
    kp = qp if (k4 is q4 and Lp == Sp) else pad_seq(k4, S, Sp)
    vp = kp if v4 is k4 else (qp if (v4 is q4 and Lp == Sp) else pad_seq(v4, S, Sp))

    grid = (B, Lp // tq, Sp // tkv)
    kernel = functools.partial(
        _fused_mha_kernel, num_heads=num_heads, head_dim=head_dim, scale=scale,
        kv_len=S, block_kv=tkv, mask_kv=(Sp != S))

    flops = 4 * B * Lp * Sp * E + 2 * B * Lp * E * E       # QK^T + PV + out-proj
    bytes_accessed = (2 * B * Lp * E + 2 * B * Sp * E + E * E + E) * q4.dtype.itemsize

    out = pl.pallas_call(
        kernel,
        out_shape=jax.ShapeDtypeStruct((B, Lp, E), q4.dtype),
        grid=grid,
        in_specs=[
            pl.BlockSpec((None, None, tq, E), lambda b, qi, ki: (qg, b, qi, 0)),
            pl.BlockSpec((None, None, tkv, E), lambda b, qi, ki: (kg, b, ki, 0)),
            pl.BlockSpec((None, None, tkv, E), lambda b, qi, ki: (vg, b, ki, 0)),
            pl.BlockSpec((E, E), lambda b, qi, ki: (0, 0)),      # out_proj.weight (resident)
            pl.BlockSpec((1, E), lambda b, qi, ki: (0, 0)),      # out_proj.bias
        ],
        out_specs=pl.BlockSpec((None, tq, E), lambda b, qi, ki: (b, qi, 0)),
        scratch_shapes=[
            pltpu.VMEM((num_heads, tq, 1), jnp.float32),   # running max m
            pltpu.VMEM((num_heads, tq, 1), jnp.float32),   # running sum l
            pltpu.VMEM((tq, E), jnp.float32),              # output accumulator
        ],
        compiler_params=pltpu.CompilerParams(
            dimension_semantics=("parallel", "parallel", "arbitrary"),
            vmem_limit_bytes=VMEM_LIMIT),
        cost_estimate=pl.CostEstimate(
            flops=flops, transcendentals=B * num_heads * Lp * Sp,
            bytes_accessed=bytes_accessed),
    )(qp, kp, vp, w_out, b_out.reshape(1, E))

    if Lp != L:
        out = out[:, :L, :]
    return out


# ---------------------------------------------------------------------------
# Module forward (glue around the kernels)
# ---------------------------------------------------------------------------

def multihead_attention_forward(query, key, value, params, num_heads):
    L, B, E = query.shape
    S = key.shape[0]
    head_dim = E // num_heads
    w, b = params["in_proj_weight"], params["in_proj_bias"]
    w_out, b_out = params["out_proj_weight"], params["out_proj_bias"]

    # Batch-first internal layout; grouped projections emit attention-ready
    # (G, B, L, E) layouts, so no QKV slicing happens in the wrapper.
    if query is key and key is value:
        # Self-attention: single fused QKV matmul, output (3, B*L, E).
        x = jnp.transpose(query, (1, 0, 2)).reshape(B * L, E)
        qkv = grouped_linear(x, w, b, groups=3).reshape(3, B, L, E)
        q4, k4, v4 = qkv, qkv, qkv
        qg, kg, vg = 0, 1, 2
    else:
        qx = jnp.transpose(query, (1, 0, 2)).reshape(B * L, E)
        q4 = grouped_linear(qx, w[:E], b[:E], groups=1).reshape(1, B, L, E)
        qg = 0
        kx = jnp.transpose(key, (1, 0, 2)).reshape(B * S, E)
        if key is value:
            kv = grouped_linear(kx, w[E:], b[E:], groups=2).reshape(2, B, S, E)
            k4, v4 = kv, kv
            kg, vg = 0, 1
        else:
            vx = jnp.transpose(value, (1, 0, 2)).reshape(B * S, E)
            k4 = grouped_linear(kx, w[E:2 * E], b[E:2 * E], groups=1).reshape(1, B, S, E)
            v4 = grouped_linear(vx, w[2 * E:], b[2 * E:], groups=1).reshape(1, B, S, E)
            kg, vg = 0, 0

    scale = 1.0 / math.sqrt(head_dim)   # TRT qkv2 plugin modelled as scaled dot-product
    out = fused_mha_outproj(q4, k4, v4, qg, kg, vg, w_out, b_out,
                            num_heads, scale)                    # (B, L, E), out-proj fused
    return jnp.transpose(out, (1, 0, 2))                         # back to (L, B, E)


# ---------------------------------------------------------------------------
# Pure-JAX reference (mirrors the PyTorch module exactly)
# ---------------------------------------------------------------------------

def reference_forward(query, key, value, params, num_heads):
    L, B, E = query.shape
    S = key.shape[0]
    Dh = E // num_heads
    w, b = params["in_proj_weight"], params["in_proj_bias"]
    q = query.reshape(L * B, E) @ w[:E].T + b[:E]
    k = key.reshape(S * B, E) @ w[E:2 * E].T + b[E:2 * E]
    v = value.reshape(S * B, E) @ w[2 * E:].T + b[2 * E:]
    q = q.reshape(L, B * num_heads, Dh).transpose(1, 0, 2)
    kT = k.reshape(S, B * num_heads, Dh).transpose(1, 2, 0)
    v = v.reshape(S, B * num_heads, Dh).transpose(1, 0, 2)
    s = jnp.einsum("bld,bds->bls", q, kT) / math.sqrt(Dh)
    p = jax.nn.softmax(s, axis=-1)
    out = jnp.einsum("bls,bsd->bld", p, v)
    out = out.transpose(1, 0, 2).reshape(L * B, E)
    out = out @ params["out_proj_weight"].T + params["out_proj_bias"]
    return out.reshape(L, B, E)


# ---------------------------------------------------------------------------

if __name__ == "__main__":
    L, B, E, H = 8, 2, 32, 4

    key0 = jax.random.PRNGKey(0)
    ks = jax.random.split(key0, 8)
    params = {
        "in_proj_weight":  jax.random.normal(ks[0], (3 * E, E), jnp.float32) * 0.1,
        "in_proj_bias":    jax.random.normal(ks[1], (3 * E,), jnp.float32) * 0.05,
        "out_proj_weight": jax.random.normal(ks[2], (E, E), jnp.float32) * 0.1,
        "out_proj_bias":   jax.random.normal(ks[3], (E,), jnp.float32) * 0.05,
    }

    # tolerances account for bf16 MXU operands and pl.reciprocal(approx=True)
    atol = rtol = 3e-2

    # 1) self-attention -> fused QKV projection path
    x = jax.random.normal(ks[4], (L, B, E), jnp.float32)
    out = jax.block_until_ready(multihead_attention_forward(x, x, x, params, H))
    ref = reference_forward(x, x, x, params, H)
    assert out.shape == (L, B, E)
    assert jnp.allclose(out, ref, atol=atol, rtol=rtol), "self-attention mismatch"

    # 2) cross-attention with key is value -> fused K/V projection path (S != L)
    S = 16
    q_in = jax.random.normal(ks[5], (L, B, E), jnp.float32)
    kv_in = jax.random.normal(ks[6], (S, B, E), jnp.float32)
    out = jax.block_until_ready(multihead_attention_forward(q_in, kv_in, kv_in, params, H))
    ref = reference_forward(q_in, kv_in, kv_in, params, H)
    assert jnp.allclose(out, ref, atol=atol, rtol=rtol), "cross-attention (k is v) mismatch"

    # 3) fully distinct query / key / value -> separate projection path
    v_in = jax.random.normal(ks[7], (S, B, E), jnp.float32)
    out = jax.block_until_ready(multihead_attention_forward(q_in, kv_in, v_in, params, H))
    ref = reference_forward(q_in, kv_in, v_in, params, H)
    assert jnp.allclose(out, ref, atol=atol, rtol=rtol), "cross-attention mismatch"

    print("KERNEL_OK")
</pallas_src>

<mosaic_0001>
module attributes {stable_mosaic.version = 11 : i64} {
  func.func @_grouped_linear_kernel(%arg0: i32, %arg1: i32, %arg2: i32, %arg3: i32, %arg4: memref<16x32xf32, #tpu.memory_space<vmem>>, %arg5: memref<1x32x32xf32, #tpu.memory_space<vmem>>, %arg6: memref<1x1x32xf32, #tpu.memory_space<vmem>>, %arg7: memref<1x16x32xf32, #tpu.memory_space<vmem>>, %arg8: memref<16x32xf32, #tpu.memory_space<vmem>>) attributes {dimension_semantics = [#tpu.dimension_semantics<parallel>, #tpu.dimension_semantics<parallel>, #tpu.dimension_semantics<parallel>, #tpu.dimension_semantics<arbitrary>], iteration_bounds = array<i64: 3, 1, 1, 1>, scalar_prefetch = 0 : i64, scratch_operands = 1 : i64, tpu.core_type = #tpu.core_type<tc>, window_params = [{transform_indices = @transform_0, window_bounds = array<i64: 16, 32>}, {transform_indices = @transform_1, window_bounds = array<i64: 1, 32, 32>}, {transform_indices = @transform_2, window_bounds = array<i64: 1, 1, 32>}, {transform_indices = @transform_3, window_bounds = array<i64: 1, 16, 32>}]} {
    %c0_i32 = arith.constant 0 : i32
    %0 = arith.cmpi eq, %arg3, %c0_i32 : i32
    %1 = arith.extui %0 : i1 to i32
    %c0_i32_0 = arith.constant 0 : i32
    %2 = arith.cmpi ne, %1, %c0_i32_0 : i32
    scf.if %2 {
      %cst_11 = arith.constant 0.000000e+00 : f32
      %15 = vector.broadcast %cst_11 : f32 to vector<16x32xf32>
      %c0_12 = arith.constant 0 : index
      %c0_13 = arith.constant 0 : index
      %16 = vector.load %arg8[%c0_12, %c0_13] : memref<16x32xf32, #tpu.memory_space<vmem>>, vector<16x32xf32>
      tpu.vector_store %arg8[%c0_12, %c0_13], %15 {strides = array<i32>} : memref<16x32xf32, #tpu.memory_space<vmem>>, vector<16x32xf32>,
    } else {
    }
    %c0 = arith.constant 0 : index
    %c0_1 = arith.constant 0 : index
    %3 = vector.load %arg8[%c0, %c0_1] : memref<16x32xf32, #tpu.memory_space<vmem>>, vector<16x32xf32>
    %c0_2 = arith.constant 0 : index
    %c0_3 = arith.constant 0 : index
    %4 = vector.load %arg4[%c0_2, %c0_3] : memref<16x32xf32, #tpu.memory_space<vmem>>, vector<16x32xf32>
    %5 = arith.truncf %4 : vector<16x32xf32> to vector<16x32xbf16>
    %c0_4 = arith.constant 0 : index
    %c0_5 = arith.constant 0 : index
    %c0_6 = arith.constant 0 : index
    %6 = vector.load %arg5[%c0_4, %c0_5, %c0_6] : memref<1x32x32xf32, #tpu.memory_space<vmem>>, vector<1x32x32xf32>
    %7 = vector.shape_cast %6 : vector<1x32x32xf32> to vector<32x32xf32>
    %8 = arith.truncf %7 : vector<32x32xf32> to vector<32x32xbf16>
    %cst = arith.constant dense<0.000000e+00> : vector<16x32xf32>
    %9 = tpu.matmul %5, %8, %cst {dimension_numbers = #tpu.dot_dimension_numbers<[1], [1], [0], [0], [0, 0, 1, 0], [], []>} : vector<16x32xbf16>, vector<32x32xbf16>, vector<16x32xf32> -> vector<16x32xf32>
    %10 = arith.addf %3, %9 : vector<16x32xf32>
    %c0_7 = arith.constant 0 : index
    %c0_8 = arith.constant 0 : index
    %11 = vector.load %arg8[%c0_7, %c0_8] : memref<16x32xf32, #tpu.memory_space<vmem>>, vector<16x32xf32>
    tpu.vector_store %arg8[%c0_7, %c0_8], %10 {strides = array<i32>} : memref<16x32xf32, #tpu.memory_space<vmem>>, vector<16x32xf32>,
    %c0_i32_9 = arith.constant 0 : i32
    %12 = arith.cmpi eq, %arg3, %c0_i32_9 : i32
    %13 = arith.extui %12 : i1 to i32
    %c0_i32_10 = arith.constant 0 : i32
    %14 = arith.cmpi ne, %13, %c0_i32_10 : i32
    scf.if %14 {
      %c0_11 = arith.constant 0 : index
      %c0_12 = arith.constant 0 : index
      %15 = vector.load %arg8[%c0_11, %c0_12] : memref<16x32xf32, #tpu.memory_space<vmem>>, vector<16x32xf32>
      %c0_13 = arith.constant 0 : index
      %c0_14 = arith.constant 0 : index
      %c0_15 = arith.constant 0 : index
      %16 = vector.load %arg6[%c0_13, %c0_14, %c0_15] : memref<1x1x32xf32, #tpu.memory_space<vmem>>, vector<1x1x32xf32>
      %17 = vector.shape_cast %16 : vector<1x1x32xf32> to vector<1x32xf32>
      %18 = vector.broadcast %17 : vector<1x32xf32> to vector<16x32xf32>
      %19 = arith.addf %15, %18 : vector<16x32xf32>
      %c0_16 = arith.constant 0 : index
      %c0_17 = arith.constant 0 : index
      %c0_18 = arith.constant 0 : index
      %20 = vector.load %arg7[%c0_16, %c0_17, %c0_18] : memref<1x16x32xf32, #tpu.memory_space<vmem>>, vector<1x16x32xf32>
      %21 = vector.shape_cast %20 : vector<1x16x32xf32> to vector<16x32xf32>
      %22 = vector.shape_cast %19 : vector<16x32xf32> to vector<1x16x32xf32>
      tpu.vector_store %arg7[%c0_16, %c0_17, %c0_18], %22 {strides = array<i32>} : memref<1x16x32xf32, #tpu.memory_space<vmem>>, vector<1x16x32xf32>,
    } else {
    }
    return
  }
  func.func @transform_0(%arg0: i32, %arg1: i32, %arg2: i32, %arg3: i32) -> (i32, i32) {
    %c0_i32 = arith.constant 0 : i32
    return %arg1, %arg3 : i32, i32
  }
  func.func @transform_1(%arg0: i32, %arg1: i32, %arg2: i32, %arg3: i32) -> (i32, i32, i32) {
    %c0_i32 = arith.constant 0 : i32
    return %arg0, %arg2, %arg3 : i32, i32, i32
  }
  func.func @transform_2(%arg0: i32, %arg1: i32, %arg2: i32, %arg3: i32) -> (i32, i32, i32) {
    %c0_i32 = arith.constant 0 : i32
    %c0_i32_0 = arith.constant 0 : i32
    return %arg0, %c0_i32, %arg2 : i32, i32, i32
  }
  func.func @transform_3(%arg0: i32, %arg1: i32, %arg2: i32, %arg3: i32) -> (i32, i32, i32) {
    %c0_i32 = arith.constant 0 : i32
    return %arg0, %arg1, %arg2 : i32, i32, i32
  }
}

</mosaic_0001>

<bundles_post_ra>
// kernel: tpu_custom_call.1
= control target key start
LH: loop header
LB: loop body
LE: loop exit
PB: predicated region body
PF: predicated region fallthrough
CT: control target
= control target key end

     0   :  { %8 = vsyncpa [#allocation4], 0  ;;  %s990_s0 = inlined_call_operand.hbm [shape: f32[16,32], index: 0, kind: input, shape index: {}]   ;;  %s991_s1 = inlined_call_operand.hbm [shape: f32[3,32,32], index: 1, kind: input, shape index: {}]   ;;  %s992_s2 = inlined_call_operand.vmem [shape: f32[3,1,32], index: 2, kind: input, shape index: {}]   ;;  %s993_s3 = inlined_call_operand.hbm [shape: f32[3,16,32], index: 3, kind: output, shape index: {}]  }
   0x1   :  { %9 = vsyncpa [#allocation7], 0 }
   0x2   :  { %11 = vsyncpa [#allocation7 + $0x1], 0 }
   0x3   :  { %12 = vsyncpa [#allocation5], 0 }
   0x4   :  { %14 = vsyncpa [#allocation5 + $0x1], 0  ;;  %s790_s12 = smov 0   ;;  %s792_s13 = smov 0  }
   0x5   :  { %s794_s14 = smov 0   ;;  %s796_s15 = smov 0  }
   0x6   :  { %s798_s16 = smov 0   ;;  %s800_s17 = smov 0  }
   0x7 LB: > { %s510_s18 = sadd.s32 4294967295, %s759_s17   ;;  %s511_s19 = sadd.s32 4294967294, %s759_s17   ;;  %s759_s17 = sphi %s800_s17, %s20_s17   ;;  %s755_s16 = sphi %s798_s16, %s1014_s16   ;;  %s751_s15 = sphi %s796_s15, %s1013_s15   ;;  %s747_s14 = sphi %s794_s14, %s1012_s14   ;;  %s743_s13 = sphi %s792_s13, %s1011_s13   ;;  %s739_s12 = sphi %s790_s12, %s1010_s12  }
   0x8   : > { %p98_p0 = scmp.ne.s32.totalorder %s743_s13, %s739_s12  ;;  %p824_p1 = scmp.eq.s32.totalorder %s510_s18, 0 }
   0x9   : > { %p828_p2 = scmp.eq.s32.totalorder %s510_s18, 2  ;;  %p160_p3 = scmp.eq.s32.totalorder %s511_s19, 2 }
   0xa   : > { %p834_p4 = por %p824_p1, %p98_p0  ;;  %p512_p5 = scmp.ge.s32.totalorder %s759_s17, 1 }
   0xb   : > { %p839_p6 = por %p160_p3, %p98_p0  ;;  %p167_p7 = scmp.lt.s32.totalorder %s759_s17, 4 }
   0xc   : > { %s761_s25 = smov [#allocation3]   ;;  %s46_s28 = sadd.s32 1, %s755_s16 }
   0xd   : > { %s1000_s23 = scalar_select %p839_p6, 1, 0 }
   0xe   : > { %p844_p8 = pnand %p512_p5, %p167_p7  ;;  %s183_s26 = sshll.u32 %s761_s25, 4  ;;  %s184_s26 = int_to_ptr.vmem [resolvable:$true] %s183_s26 }
   0xf   : > { %s632_s29 = scalar_lea.vmem %s184_s26, 256  ;;  %p640_p3 = scmp.lt.s32.totalorder %s184_s26, %s184_s26 }
  0x10   : > { %p550_p9 = pneg %p844_p8  ;;  %p633_p12 = scmp.ne.s32.totalorder %s184_s26, %s632_s29 }
  0x11   : > { %p641_p5 = scmp.lt.s32.totalorder %s632_s29, %s632_s29 }
  0x12   : > { %p852_p10 = pnand %p550_p9, %p824_p1 }
  0x13   : > { %p642_p7 = por %p641_p5, %p640_p3 }
  0x14   : > { %p623_p11 = pneg %p852_p10 }
  0x16   : > { %p635_p13 = pnand %p633_p12, %p623_p11 }
  0x18   : > { %p636_p0 = pneg %p635_p13 }
  0x1a   : > { %p643_p6 = pnand %p642_p7, %p636_p0 }
  0x1c   : > { %646 = shalt.err (!%p643_p6)
}
  0x1d   : > { %s994_s30 = smov 128   ;;  %s995_s4 = smov 8  }
  0x1e   : > { %553 = dma.hbm_to_vmem [thread:$0]  (!%p852_p10), %s990_s0, 256, %s184_s26, [#allocation4], %s994_s30, %s994_s30, %s995_s4  }
  0x1f   : > { %p48_p6 = scmp.ge.s32.totalorder %s46_s28, 3  ;;  %s85_s7 = sadd.s32 1, %s747_s14 }
  0x20   : > { %p92_p9 = scmp.ne.s32.totalorder %s747_s14, %s743_s13  ;;  %p93_p11 = scmp.eq.s32.totalorder %s759_s17, 0 }
  0x21   : > { %s1016_s28 = smov (%p48_p6, %s46_s28), 0  ;;  %p563_p0 = scmp.lt.s32.totalorder %s759_s17, 3 }
  0x22   : > { %p873_p12 = por %p93_p11, %p92_p9  ;;  %p879_p13 = por %p828_p2, %p92_p9 }
  0x23   : > { %s78_s10 = ssub.s32 %s755_s16, %s1016_s28  ;;  %s197_s11 = sand.u32 1, %s747_s14  }
  0x24   : > { %s1004_s9 = scalar_select %p879_p13, 1, 0 }
  0x25   : > { %p83_p10 = scmp.eq.s32.totalorder %s78_s10, 0  ;;  %s515_s18 = sshll.u32 %s197_s11, 5 }
  0x26   : > { %s529_s25 = sshll.u32 %s755_s16, 9  ;;  %s201_s5 = scalar_lea.vmem [#allocation6], %s515_s18 }
  0x27   : > { %s888_s19 = scalar_select %p83_p10, %s747_s14, %s85_s7  }
  0x28   : > { %s210_s29 = scalar_lea.hbm %s991_s1, %s529_s25  ;;  %s211_s6 = sshll.u32 %s201_s5, 4  ;;  %s212_s6 = int_to_ptr.vmem [resolvable:$true] %s211_s6 }
  0x29   : > { %p896_p2 = pnand %p563_p0, %p873_p12  ;;  %s198_s30 = scalar_lea.sflag [#allocation7], %s197_s11 }
  0x2a   : > { %s660_s10 = scalar_lea.vmem %s212_s6, 512  ;;  %s764_s7 = smov [#allocation6]  }
  0x2b   : > { %p649_p3 = pneg %p896_p2  ;;  %p661_p5 = scmp.ne.s32.totalorder %s212_s6, %s660_s10 }
  0x2c   : > { %s665_s4 = sshll.u32 %s764_s7, 4  ;;  %s666_s4 = int_to_ptr.vmem [resolvable:$false] %s665_s4 }
  0x2d   : > { %p663_p7 = pnand %p661_p5, %p649_p3  ;;  %s667_s25 = scalar_lea.vmem %s666_s4, 1024 }
  0x2e   : > { %p668_p9 = scmp.lt.s32.totalorder %s212_s6, %s666_s4  ;;  %p669_p11 = scmp.lt.s32.totalorder %s667_s25, %s660_s10 }
  0x2f   : > { %p664_p6 = pneg %p663_p7 }
  0x30   : > { %p670_p10 = por %p669_p11, %p668_p9 }
  0x32   : > { %p671_p13 = pnand %p670_p10, %p664_p6 }
  0x34   : > { %674 = shalt.err (!%p671_p13)
}
  0x35   : > { %s1006_s8 = smov 8   ;;  %s1007_s18 = smov 128  }
  0x36   : > { %557 = dma.hbm_to_vmem [thread:$0]  (!%p896_p2), %s210_s29, 512, %s212_s6, %s198_s30, %s1007_s18, %s1007_s18, %s1006_s8  }
  0x37   : > { %232 = sbr.rel (%p844_p8) target bundleno = 307 (0x133), region = 32 }
  0x3c   : > { %726 = dma.done.wait (%p824_p1), [#allocation4], 256  }
  0x3d   : > { %728 = vsyncadd (%p824_p1), [#allocation4], 4294967040  ;;  %s914_s4 = sand.u32 1, %s743_s13  }
  0x3e   : > { %s520_s11 = sshll.u32 %s914_s4, 5  ;;  %s239_s26 = scalar_lea.sflag [#allocation7], %s914_s4 }
  0x3f   : > { %s242_s27 = scalar_lea.vmem [#allocation6], %s520_s11 }
  0x40   : > { %730 = dma.done.wait (%p834_p4), %s239_s26, 512  }
  0x41   : > { %732 = vsyncadd (%p834_p4), %s239_s26, 4294966784  ;;  %vm285_vm0 = vcmask 261120   ;;  %v765_v0 = vmov 0.0   ;;  %vm766_vm1 = vmmov 0   ;;  %v295_v1 = vld [vmem:[%s242_s27 + $0x10] sm:$0xff]  ;;  %v296_v2 = vld [vmem:[%s242_s27 + $0x18] sm:$0xff] }
  0x42   : > { %286 = vst.msk [vmem:[#allocation2] sm:$0xff] %vm285_vm0, %v765_v0  ;;  %287 = vst.msk [vmem:[#allocation2 + $0x8] sm:$0xff] %vm285_vm0, %v765_v0  ;;  %534 = vmatprep.subr.bf16.mxu0 %v765_v0  ;;  %538 = vmatprep.mubr.msk.bf16.mxu0 %vm766_vm1, %v765_v0  ;;  %v298_v3 = vpack.c.bf16 %v296_v2, %v295_v1  ;;  %v293_v4 = vld [vmem:[%s242_s27] sm:$0xff]  ;;  %v294_v5 = vld [vmem:[%s242_s27 + $0x8] sm:$0xff]  ;;  %p273_p1 = scmp.lt.s32.totalorder %s751_s15, 2  ;;  %s521_s29 = sshll.u32 %s914_s4, 4 }
  0x43   : > { %v297_v7 = vpack.c.bf16 %v294_v5, %v293_v4  ;;  %v290_v9 = vld [vmem:[#allocation3] sm:$0xff]  ;;  %v291_v10 = vld [vmem:[#allocation3 + $0x8] sm:$0xff]  ;;  %s530_s5 = sshll.u32 %s751_s15, 8  ;;  %s270_s6 = scalar_lea.vmem [#allocation8], %s521_s29 }
  0x44   : > { %v307_v6 = vsel %vm285_vm0, %v298_v3, 0  ;;  %v292_v11 = vpack.c.bf16 %v291_v10, %v290_v9  ;;  %s274_s20 = scalar_select %p273_p1, %s751_s15, 2 }
  0x45   : > { %535 = vmatpush3.bf16.xpose.msra.mxu0 %v307_v6  ;;  %v304_v8 = vsel %vm285_vm0, %v297_v7, 0  ;;  %s387_s21 = sshll.u32 %s270_s6, 4  ;;  %s940_s25 = scalar_lea.hbm %s993_s3, %s530_s5  ;;  %s942_s21 = int_to_ptr.vmem [resolvable:$true] %s387_s21 }
  0x46   : > { %536 = vmatprep.subr.bf16.mxu0 %v765_v0  ;;  %s278_s30 = scalar_lea.vmem %s992_s2, %s274_s20  ;;  %s371_s8 = scalar_lea.sflag [#allocation5], %s914_s4 }
  0x47   : > { %v523_v20 = vld [vmem:[%s278_s30] ss:$0 sm:$0xff]  ;;  %s675_s15 = scalar_lea.vmem %s942_s21, 256  ;;  %p1008_p8 = scmp.ne.s32.totalorder %s1004_s9, 0 }
  0x48   : > { %p676_p4 = scmp.ne.s32.totalorder %s942_s21, %s675_s15  ;;  %s767_s18 = smov [#allocation8]  }
  0x49   : > { %v288_v12 = vld [vmem:[#allocation2] sm:$0xff]  ;;  %v289_v16 = vld [vmem:[#allocation2 + $0x8] sm:$0xff]  ;;  %s679_s11 = sshll.u32 %s767_s18, 4  ;;  %s680_s11 = int_to_ptr.vmem [resolvable:$false] %s679_s11 }
  0x4a   : > { %p677_p12 = pnand %p676_p4, %p1008_p8  ;;  %s681_s26 = scalar_lea.vmem %s680_s11, 512 }
  0x4b   : > { %p682_p0 = scmp.lt.s32.totalorder %s942_s21, %s680_s11  ;;  %p683_p2 = scmp.lt.s32.totalorder %s681_s26, %s675_s15 }
  0x4c   : > { %p678_p13 = pneg %p677_p12 }
  0x4d   : > { %537 = vmatpush3.bf16.xpose.msra.mxu0 %v304_v8  ;;  %p684_p3 = por %p683_p2, %p682_p0 }
  0x4f   : > { %p685_p5 = pnand %p684_p3, %p678_p13 }
  0x54   : > { %539 = vmatmul.mubr.msk.bf16.vlgmr.msra.gmra.mxu0 %vm285_vm0, %v292_v11 }
 0x114   : > { %v343_v13 = vpop.f32.mrf.mxu0 }
 0x115   : > { %v350_v14 = vadd.f32 %v343_v13, %v288_v12 }
 0x116   : > { %v540_v15 = vpop.f32.mrf.mxu0 }
 0x117   : > { %352 = vst.msk [vmem:[#allocation2] sm:$0xff] %vm285_vm0, %v350_v14 }
 0x118   : > { %v346_v17 = vpop.f32.mrf.mxu0 }
 0x119   : > { %v351_v18 = vadd.f32 %v346_v17, %v289_v16 }
 0x11a   : > { %v541_v19 = vpop.f32.mrf.mxu0 }
 0x11b   : > { %353 = vst.msk [vmem:[#allocation2 + $0x8] sm:$0xff] %vm285_vm0, %v351_v18 }
 0x11e   : > { %v357_v21 = vld [vmem:[#allocation2] sm:$0xff] }
 0x11f   : > { %v366_v22 = vadd.f32 %v523_v20, %v357_v21 }
 0x121   : > { %368 = vst.msk [vmem:[%s270_s6] sm:$0xff] %vm285_vm0, %v366_v22 }
 0x122   : > { %v358_v23 = vld [vmem:[#allocation2 + $0x8] sm:$0xff] }
 0x123   : > { %v367_v24 = vadd.f32 %v523_v20, %v358_v23 }
 0x125   : > { %369 = vst.msk [vmem:[%s270_s6 + $0x8] sm:$0xff] %vm285_vm0, %v367_v24 }
 0x126   : > { %688 = shalt.err (!%p685_p5)
}
 0x127   : > { %s689_s27 = scalar_lea.hbm %s940_s25, 256  ;;  %s693_s24 = scalar_lea.hbm %s993_s3, 768 }
 0x128   : > { %p690_p7 = scmp.ne.s32.totalorder %s940_s25, %s689_s27  ;;  %p694_p11 = scmp.lt.s32.totalorder %s940_s25, %s993_s3 }
 0x129   : > { %p695_p10 = scmp.lt.s32.totalorder %s693_s24, %s689_s27 }
 0x12a   : > { %p691_p6 = pnand %p690_p7, %p1008_p8 }
 0x12b   : > { %p696_p1 = por %p695_p10, %p694_p11 }
 0x12c   : > { %p692_p9 = pneg %p691_p6 }
 0x12e   : > { %p697_p4 = pnand %p696_p1, %p692_p9 }
 0x130   : > { %700 = shalt.err (!%p697_p4)
}
 0x131   : > { %s768_s5 = smov 128   ;;  %s769_s6 = smov 8  }
 0x132   : > { %548 = dma.vmem_to_hbm [thread:$0]  (%p1008_p8), %s942_s21, 256, %s940_s25, %s371_s8, %s768_s5, %s768_s5, %s769_s6  }
 0x133 PF: > { %p565_p12 = scmp.ge.s32.totalorder %s759_s17, 2  ;;  %s402_s10 = sand.u32 1, %s739_s12  }
 0x134   : > { %p1009_p13 = scmp.ne.s32.totalorder %s1000_s23, 0  ;;  %s403_s7 = scalar_lea.sflag [#allocation5], %s402_s10 }
 0x136   : > { %p559_p0 = pnand %p565_p12, %p1009_p13 }
 0x138   : > { %p560_p2 = pneg %p559_p0 }
 0x13a   : > { %734 = dma.done.wait (%p560_p2), %s403_s7, 256  }
 0x13b   : > { %736 = vsyncadd (%p560_p2), %s403_s7, 4294967040  ;;  %s20_s17 = sadd.s32 1, %s759_s17   ;;  %s1010_s12 = smov %s743_s13 }
 0x13c   : > { %p17_p3 = scmp.ge.s32.totalorder %s20_s17, 5   ;;  %s1011_s13 = smov %s747_s14 }
 0x13d   : > { %s1012_s14 = smov %s888_s19  ;;  %s1013_s15 = smov %s755_s16 }
 0x13e   : > { %s1014_s16 = smov %s1016_s28  ;;  %19 = sbr.rel (!%p17_p3) target bundleno = 7 (0x7), region = 94 }
 0x143   :  { %408 = vsyncpa [#allocation4], 1 }
 0x144   :  { %410 = vsyncpa [#allocation4 + $0x1], 1 }
 0x145   :  { %411 = vsyncpa [#allocation7], 1 }
 0x146   :  { %413 = vsyncpa [#allocation7 + $0x1], 1 }
 0x147   :  { %414 = vsyncpa [#allocation5], 1 }
 0x148   :  { %416 = vsyncpa [#allocation5 + $0x1], 1 }

</bundles_post_ra>
